<compile_context>
chip_gen: v6e
topology: v6e:2x2x1
jax: 0.10.0
libtpu: 0.0.40
codegen_flags: <defaults>
</compile_context>

<pallas_src>
import functools
import math

import jax
import jax.numpy as jnp
from jax.experimental import pallas as pl
from jax.experimental.pallas import tpu as pltpu


_VMEM_LIMIT = 32 * 1024 * 1024   # safe on v5e / v6e / v7x scoped-VMEM budgets


def _up2_nearest(x):
    """Nearest-neighbour 2x spatial upsample of an (H, W, C) array (in-kernel)."""
    h, w, c = x.shape
    x = jnp.broadcast_to(x[:, :, None, :], (h, w, 2, c)).reshape(h, 2 * w, c)
    x = jnp.broadcast_to(x[:, None, :, :], (h, 2, 2 * w, c)).reshape(2 * h, 2 * w, c)
    return x


# --------------------------- fused conv-block kernel -------------------------

def _conv_block_kernel(x_ref, w_ref, b_ref, o_ref, *maybe_pad, ksize, pad,
                       upsample, input_pixelnorm, do_pixelnorm, do_lrelu,
                       n_slope, w_scale):
    x = x_ref[0].astype(jnp.float32)                        # (H, W, Cin)
    if input_pixelnorm:   # fused code_norm (PixelNorm on the latent)
        x = x * jax.lax.rsqrt(jnp.mean(x * x, axis=-1, keepdims=True) + 1e-8)
    if upsample:          # fused F.upsample(scale_factor=2, mode='nearest')
        x = _up2_nearest(x)
    h_eff, w_eff, cin = x.shape
    h_out = h_eff + 2 * pad - ksize + 1
    w_out = w_eff + 2 * pad - ksize + 1

    if pad > 0:
        pad_ref = maybe_pad[0]                              # (h_eff+2p, w_eff+2p, cin) f32
        pad_ref[...] = jnp.zeros_like(pad_ref)
        pad_ref[pad:pad + h_eff, pad:pad + w_eff, :] = x

        def tap(i, j):
            return pad_ref[i:i + h_out, j:j + w_out, :]
    else:
        def tap(i, j):
            return x[i:i + h_out, j:j + w_out, :]

    # im2col: fold the (kh, kw) taps into the contraction dim -> one big matmul.
    taps = [tap(i, j) for i in range(ksize) for j in range(ksize)]
    patches = taps[0] if len(taps) == 1 else jnp.concatenate(taps, axis=-1)
    m = h_out * w_out
    patches = patches.reshape(m, ksize * ksize * cin).astype(jnp.bfloat16)

    w = (w_ref[...].astype(jnp.float32) * jnp.float32(w_scale)).astype(jnp.bfloat16)
    acc = jnp.dot(patches, w, preferred_element_type=jnp.float32)    # (m, Cout) f32
    acc = acc + b_ref[...].astype(jnp.float32)
    if do_pixelnorm:
        acc = acc * jax.lax.rsqrt(jnp.mean(acc * acc, axis=-1, keepdims=True) + 1e-8)
    if do_lrelu:
        acc = jnp.where(acc >= 0.0, acc, jnp.float32(n_slope) * acc)
    o_ref[0] = acc.astype(o_ref.dtype)                      # lane-dense (m, Cout) store


def conv2d_fused(x, w_hwio, b, *, pad, w_scale=1.0, upsample=False,
                 input_pixelnorm=False, do_pixelnorm=False, do_lrelu=False,
                 n_slope=0.2):
    """Fused conv2d(stride=1) block.  x: (N,H,W,Cin), w: (KH,KW,Cin,Cout) HWIO."""
    n, h, wd, cin = x.shape
    kh, kw, cin_w, cout = w_hwio.shape
    assert kh == kw and cin_w == cin
    ksize = kh
    h_eff, w_eff = (2 * h, 2 * wd) if upsample else (h, wd)
    h_out = h_eff + 2 * pad - ksize + 1
    w_out = w_eff + 2 * pad - ksize + 1
    m = h_out * w_out
    k_dim = ksize * ksize * cin

    w2 = w_hwio.reshape(k_dim, cout)     # free reshape; matches patch ordering
    b2 = b.reshape(1, cout)

    kern = functools.partial(
        _conv_block_kernel, ksize=ksize, pad=pad, upsample=upsample,
        input_pixelnorm=input_pixelnorm, do_pixelnorm=do_pixelnorm,
        do_lrelu=do_lrelu, n_slope=float(n_slope), w_scale=float(w_scale))

    scratch = []
    if pad > 0:
        scratch.append(pltpu.VMEM((h_eff + 2 * pad, w_eff + 2 * pad, cin),
                                  jnp.float32))

    out = pl.pallas_call(
        kern,
        out_shape=jax.ShapeDtypeStruct((n, m, cout), x.dtype),
        grid=(n,),
        in_specs=[
            pl.BlockSpec((1, h, wd, cin), lambda i: (i, 0, 0, 0)),
            pl.BlockSpec((k_dim, cout), lambda i: (0, 0)),
            pl.BlockSpec((1, cout), lambda i: (0, 0)),
        ],
        out_specs=pl.BlockSpec((1, m, cout), lambda i: (i, 0, 0)),
        scratch_shapes=scratch,
        compiler_params=pltpu.CompilerParams(
            dimension_semantics=("parallel",),
            vmem_limit_bytes=_VMEM_LIMIT),
    )(x, w2, b2)
    return out.reshape(n, h_out, w_out, cout)


# ----------------------- fused to_rgb + fade-in blend ------------------------

def _to_rgb_blend_kernel(alpha_ref, xn_ref, xp_ref, wn_ref, bn_ref, wp_ref,
                         bp_ref, o_ref, *, h_half, w_half):
    a = alpha_ref[0]                                        # runtime SMEM scalar
    new = jnp.dot(xn_ref[0].astype(jnp.bfloat16),
                  wn_ref[...].astype(jnp.bfloat16),
                  preferred_element_type=jnp.float32)
    new = new + bn_ref[...].astype(jnp.float32)             # (4*h_half*w_half, 3)
    skip = jnp.dot(xp_ref[0].astype(jnp.bfloat16),
                   wp_ref[...].astype(jnp.bfloat16),
                   preferred_element_type=jnp.float32)
    skip = skip + bp_ref[...].astype(jnp.float32)           # (h_half*w_half, 3)
    # 1x1 conv commutes with nearest upsample: to_rgb(up(x)) == up(to_rgb(x)).
    skip = _up2_nearest(skip.reshape(h_half, w_half, 3))
    skip = skip.reshape(4 * h_half * w_half, 3)
    o_ref[0] = ((1.0 - a) * skip + a * new).astype(o_ref.dtype)


def to_rgb_blend(x_new, x_prev, rgb_new, rgb_prev, alpha):
    """Fused to_rgb(x_new) / to_rgb(upsample(x_prev)) / fade-in blend."""
    n, h, w, cn = x_new.shape
    _, h2, w2, cp = x_prev.shape
    m, m2 = h * w, h2 * w2
    wn = rgb_new['w'].reshape(cn, 3)
    wp = rgb_prev['w'].reshape(cp, 3)
    bn = rgb_new['b'].reshape(1, 3)
    bp = rgb_prev['b'].reshape(1, 3)
    alpha_arr = jnp.asarray(alpha, jnp.float32).reshape(1)   # runtime scalar

    kern = functools.partial(_to_rgb_blend_kernel, h_half=h2, w_half=w2)
    out = pl.pallas_call(
        kern,
        out_shape=jax.ShapeDtypeStruct((n, m, 3), x_new.dtype),
        grid=(n,),
        in_specs=[
            pl.BlockSpec(memory_space=pltpu.MemorySpace.SMEM),   # alpha
            pl.BlockSpec((1, m, cn), lambda i: (i, 0, 0)),
            pl.BlockSpec((1, m2, cp), lambda i: (i, 0, 0)),
            pl.BlockSpec((cn, 3), lambda i: (0, 0)),
            pl.BlockSpec((1, 3), lambda i: (0, 0)),
            pl.BlockSpec((cp, 3), lambda i: (0, 0)),
            pl.BlockSpec((1, 3), lambda i: (0, 0)),
        ],
        out_specs=pl.BlockSpec((1, m, 3), lambda i: (i, 0, 0)),
        compiler_params=pltpu.CompilerParams(
            dimension_semantics=("parallel",),
            vmem_limit_bytes=_VMEM_LIMIT),
    )(alpha_arr, x_new.reshape(n, m, cn), x_prev.reshape(n, m2, cp),
      wn, bn, wp, bp)
    return out.reshape(n, h, w, 3)


# --------------------------- parameters (synthetic) ---------------------------

def _init_eq_conv(key, cin, cout, k):
    # EqualizedConv2d: weight ~ N(0,1), bias = 0, runtime scale sqrt(2/fan_in)
    w = jax.random.normal(key, (k, k, cin, cout), jnp.float32)
    b = jnp.zeros((cout,), jnp.float32)
    scale = math.sqrt(2.0 / (cin * k * k))
    return {'w': w, 'b': b, 'scale': scale}


def _init_rgb_conv(key, cin):
    # nn.Conv2d(cin, 3, 1) default-style init (uniform, deterministic here)
    kw_, kb_ = jax.random.split(key)
    bound = 1.0 / math.sqrt(cin)
    w = jax.random.uniform(kw_, (1, 1, cin, 3), jnp.float32, -bound, bound)
    b = jax.random.uniform(kb_, (3,), jnp.float32, -bound, bound)
    return {'w': w, 'b': b}


def init_generator_params(key, channel_list):
    blocks, to_rgbs = [], []
    for i, c_out in enumerate(channel_list):
        c_in = channel_list[i - 1] if i > 0 else channel_list[0]
        k1, p1 = (4, 3) if i == 0 else (3, 1)
        k2, p2 = 3, 1
        key, ka, kb, kc = jax.random.split(key, 4)
        blocks.append({
            'conv1': _init_eq_conv(ka, c_in, c_out, k1), 'pad1': p1,
            'conv2': _init_eq_conv(kb, c_out, c_out, k2), 'pad2': p2,
        })
        to_rgbs.append(_init_rgb_conv(kc, c_out))
    return {'blocks': blocks, 'to_rgb': to_rgbs}


# ----------------------------------- forward ----------------------------------

def generator_forward(params, x_nchw, step=0, alpha=-1.0, n_slope=0.2):
    out = jnp.transpose(x_nchw, (0, 2, 3, 1))                # NCHW -> NHWC
    for i, blk in enumerate(params['blocks']):
        prev = out                                           # pre-upsample skip input
        c1, c2 = blk['conv1'], blk['conv2']
        h = conv2d_fused(out, c1['w'], c1['b'], pad=blk['pad1'],
                         w_scale=c1['scale'], upsample=(i > 0),
                         input_pixelnorm=(i == 0), do_pixelnorm=True,
                         do_lrelu=True, n_slope=n_slope)
        out = conv2d_fused(h, c2['w'], c2['b'], pad=blk['pad2'],
                           w_scale=c2['scale'], do_pixelnorm=True,
                           do_lrelu=True, n_slope=n_slope)
        if i == step:
            rgb = params['to_rgb'][i]
            if i != 0 and 0.0 <= alpha < 1.0:
                out = to_rgb_blend(out, prev, rgb, params['to_rgb'][i - 1], alpha)
            else:
                out = conv2d_fused(out, rgb['w'], rgb['b'], pad=0)
            break
    return jnp.transpose(out, (0, 3, 1, 2))                  # NHWC -> NCHW


# -------------------------- pure-JAX reference (check) -------------------------

def _nearest_up2_ref(x):
    return jnp.repeat(jnp.repeat(x, 2, axis=1), 2, axis=2)


def _ref_conv(x, w, b, padding, w_scale=1.0):
    out = jax.lax.conv_general_dilated(
        x, w * w_scale, window_strides=(1, 1),
        padding=[(padding, padding), (padding, padding)],
        dimension_numbers=('NHWC', 'HWIO', 'NHWC'))
    return out + b.reshape(1, 1, 1, -1)


def _ref_pn(x):
    return x / jnp.sqrt(jnp.mean(x * x, axis=-1, keepdims=True) + 1e-8)


def _ref_lrelu(x, s):
    return jnp.where(x >= 0, x, s * x)


def reference_forward(params, x_nchw, step=0, alpha=-1.0, n_slope=0.2):
    x = jnp.transpose(x_nchw, (0, 2, 3, 1))
    out = _ref_pn(x)
    upsample = None
    for i, blk in enumerate(params['blocks']):
        h = _nearest_up2_ref(out) if i > 0 else out
        if i > 0:
            upsample = h
        c1, c2 = blk['conv1'], blk['conv2']
        h = _ref_lrelu(_ref_pn(_ref_conv(h, c1['w'], c1['b'], blk['pad1'],
                                         c1['scale'])), n_slope)
        out = _ref_lrelu(_ref_pn(_ref_conv(h, c2['w'], c2['b'], blk['pad2'],
                                           c2['scale'])), n_slope)
        if i == step:
            rgb = params['to_rgb'][i]
            out = _ref_conv(out, rgb['w'], rgb['b'], 0)
            if i != 0 and 0.0 <= alpha < 1.0:
                prev = params['to_rgb'][i - 1]
                skip = _ref_conv(upsample, prev['w'], prev['b'], 0)
                out = (1.0 - alpha) * skip + alpha * out
            break
    return jnp.transpose(out, (0, 3, 1, 2))


# ------------------------------------- main ------------------------------------

if __name__ == "__main__":
    key = jax.random.PRNGKey(0)
    k_params, k_x = jax.random.split(key)

    # Down-scaled channel list (PyTorch default is [512, ..., 32]).
    channel_list = [32, 32, 16]
    params = init_generator_params(k_params, channel_list)

    # Latent code, NCHW, 1x1 spatial (PGGAN convention).
    x = jax.random.normal(k_x, (2, channel_list[0], 1, 1), jnp.float32)

    # step=0 path (default args).
    out0 = jax.block_until_ready(generator_forward(params, x))
    assert out0.shape == (2, 3, 4, 4), out0.shape
    ref0 = reference_forward(params, x)
    assert bool(jnp.allclose(out0, ref0, rtol=5e-2, atol=5e-2))

    # step=1 with fade-in blend (alpha in [0, 1)).
    out1 = jax.block_until_ready(generator_forward(params, x, step=1, alpha=0.5))
    assert out1.shape == (2, 3, 8, 8), out1.shape
    assert bool(jnp.isfinite(out1).all())
    ref1 = reference_forward(params, x, step=1, alpha=0.5)
    assert bool(jnp.allclose(out1, ref1, rtol=5e-2, atol=5e-2))

    # step=2 with a different alpha (exercises the third block + blend reuse
    # without recompiling the blend kernel for the new alpha value).
    out2 = jax.block_until_ready(generator_forward(params, x, step=2, alpha=0.25))
    assert out2.shape == (2, 3, 16, 16), out2.shape
    ref2 = reference_forward(params, x, step=2, alpha=0.25)
    assert bool(jnp.allclose(out2, ref2, rtol=5e-2, atol=5e-2))

    print("KERNEL_OK")
</pallas_src>

<mosaic_0001>
module attributes {stable_mosaic.version = 11 : i64} {
  func.func @_conv_block_kernel(%arg0: i32, %arg1: memref<1x1x1x32xf32, #tpu.memory_space<vmem>>, %arg2: memref<512x32xf32, #tpu.memory_space<vmem>>, %arg3: memref<1x32xf32, #tpu.memory_space<vmem>>, %arg4: memref<1x16x32xf32, #tpu.memory_space<vmem>>, %arg5: memref<7x7x32xf32, #tpu.memory_space<vmem>>) attributes {dimension_semantics = [#tpu.dimension_semantics<parallel>], iteration_bounds = array<i64: 2>, scalar_prefetch = 0 : i64, scratch_operands = 1 : i64, tpu.core_type = #tpu.core_type<tc>, window_params = [{transform_indices = @transform_0, window_bounds = array<i64: 1, 1, 1, 32>}, {pipeline_mode = #tpu.pipeline_mode<synchronous>, transform_indices = @transform_1, window_bounds = array<i64: 512, 32>}, {pipeline_mode = #tpu.pipeline_mode<synchronous>, transform_indices = @transform_2, window_bounds = array<i64: 1, 32>}, {transform_indices = @transform_3, window_bounds = array<i64: 1, 16, 32>}]} {
    %c0 = arith.constant 0 : index
    %c0_0 = arith.constant 0 : index
    %c0_1 = arith.constant 0 : index
    %c0_2 = arith.constant 0 : index
    %0 = vector.load %arg1[%c0, %c0_0, %c0_1, %c0_2] : memref<1x1x1x32xf32, #tpu.memory_space<vmem>>, vector<1x1x1x32xf32>
    %1 = vector.shape_cast %0 : vector<1x1x1x32xf32> to vector<1x1x32xf32>
    %2 = arith.mulf %1, %1 : vector<1x1x32xf32>
    %cst = arith.constant dense<0.000000e+00> : vector<1x1xf32>
    %3 = vector.multi_reduction <add>, %2, %cst [2] : vector<1x1x32xf32> to vector<1x1xf32>
    %4 = vector.shape_cast %3 : vector<1x1xf32> to vector<1x1x1xf32>
    %cst_3 = arith.constant 3.200000e+01 : f32
    %5 = vector.broadcast %cst_3 : f32 to vector<1x1x1xf32>
    %6 = arith.divf %4, %5 : vector<1x1x1xf32>
    %cst_4 = arith.constant 9.99999993E-9 : f32
    %7 = vector.broadcast %cst_4 : f32 to vector<1x1x1xf32>
    %8 = arith.addf %6, %7 : vector<1x1x1xf32>
    %9 = math.rsqrt %8 : vector<1x1x1xf32>
    %10 = vector.broadcast %9 : vector<1x1x1xf32> to vector<1x1x32xf32>
    %11 = arith.mulf %1, %10 : vector<1x1x32xf32>
    %cst_5 = arith.constant 0.000000e+00 : f32
    %12 = vector.broadcast %cst_5 : f32 to vector<7x7x32xf32>
    %c0_6 = arith.constant 0 : index
    %c0_7 = arith.constant 0 : index
    %c0_8 = arith.constant 0 : index
    %13 = vector.load %arg5[%c0_6, %c0_7, %c0_8] : memref<7x7x32xf32, #tpu.memory_space<vmem>>, vector<7x7x32xf32>
    tpu.vector_store %arg5[%c0_6, %c0_7, %c0_8], %12 {strides = array<i32>} : memref<7x7x32xf32, #tpu.memory_space<vmem>>, vector<7x7x32xf32>,
    %c3 = arith.constant 3 : index
    %c3_9 = arith.constant 3 : index
    %c0_10 = arith.constant 0 : index
    %14 = vector.load %arg5[%c3, %c3_9, %c0_10] : memref<7x7x32xf32, #tpu.memory_space<vmem>>, vector<1x1x32xf32>
    tpu.vector_store %arg5[%c3, %c3_9, %c0_10], %11 {strides = array<i32>} : memref<7x7x32xf32, #tpu.memory_space<vmem>>, vector<1x1x32xf32>,
    %c0_11 = arith.constant 0 : index
    %c0_12 = arith.constant 0 : index
    %c0_13 = arith.constant 0 : index
    %15 = vector.load %arg5[%c0_11, %c0_12, %c0_13] : memref<7x7x32xf32, #tpu.memory_space<vmem>>, vector<4x4x32xf32>
    %c0_14 = arith.constant 0 : index
    %c1 = arith.constant 1 : index
    %c0_15 = arith.constant 0 : index
    %16 = vector.load %arg5[%c0_14, %c1, %c0_15] : memref<7x7x32xf32, #tpu.memory_space<vmem>>, vector<4x4x32xf32>
    %c0_16 = arith.constant 0 : index
    %c2 = arith.constant 2 : index
    %c0_17 = arith.constant 0 : index
    %17 = vector.load %arg5[%c0_16, %c2, %c0_17] : memref<7x7x32xf32, #tpu.memory_space<vmem>>, vector<4x4x32xf32>
    %c0_18 = arith.constant 0 : index
    %c3_19 = arith.constant 3 : index
    %c0_20 = arith.constant 0 : index
    %18 = vector.load %arg5[%c0_18, %c3_19, %c0_20] : memref<7x7x32xf32, #tpu.memory_space<vmem>>, vector<4x4x32xf32>
    %c1_21 = arith.constant 1 : index
    %c0_22 = arith.constant 0 : index
    %c0_23 = arith.constant 0 : index
    %19 = vector.load %arg5[%c1_21, %c0_22, %c0_23] : memref<7x7x32xf32, #tpu.memory_space<vmem>>, vector<4x4x32xf32>
    %c1_24 = arith.constant 1 : index
    %c1_25 = arith.constant 1 : index
    %c0_26 = arith.constant 0 : index
    %20 = vector.load %arg5[%c1_24, %c1_25, %c0_26] : memref<7x7x32xf32, #tpu.memory_space<vmem>>, vector<4x4x32xf32>
    %c1_27 = arith.constant 1 : index
    %c2_28 = arith.constant 2 : index
    %c0_29 = arith.constant 0 : index
    %21 = vector.load %arg5[%c1_27, %c2_28, %c0_29] : memref<7x7x32xf32, #tpu.memory_space<vmem>>, vector<4x4x32xf32>
    %c1_30 = arith.constant 1 : index
    %c3_31 = arith.constant 3 : index
    %c0_32 = arith.constant 0 : index
    %22 = vector.load %arg5[%c1_30, %c3_31, %c0_32] : memref<7x7x32xf32, #tpu.memory_space<vmem>>, vector<4x4x32xf32>
    %c2_33 = arith.constant 2 : index
    %c0_34 = arith.constant 0 : index
    %c0_35 = arith.constant 0 : index
    %23 = vector.load %arg5[%c2_33, %c0_34, %c0_35] : memref<7x7x32xf32, #tpu.memory_space<vmem>>, vector<4x4x32xf32>
    %c2_36 = arith.constant 2 : index
    %c1_37 = arith.constant 1 : index
    %c0_38 = arith.constant 0 : index
    %24 = vector.load %arg5[%c2_36, %c1_37, %c0_38] : memref<7x7x32xf32, #tpu.memory_space<vmem>>, vector<4x4x32xf32>
    %c2_39 = arith.constant 2 : index
    %c2_40 = arith.constant 2 : index
    %c0_41 = arith.constant 0 : index
    %25 = vector.load %arg5[%c2_39, %c2_40, %c0_41] : memref<7x7x32xf32, #tpu.memory_space<vmem>>, vector<4x4x32xf32>
    %c2_42 = arith.constant 2 : index
    %c3_43 = arith.constant 3 : index
    %c0_44 = arith.constant 0 : index
    %26 = vector.load %arg5[%c2_42, %c3_43, %c0_44] : memref<7x7x32xf32, #tpu.memory_space<vmem>>, vector<4x4x32xf32>
    %c3_45 = arith.constant 3 : index
    %c0_46 = arith.constant 0 : index
    %c0_47 = arith.constant 0 : index
    %27 = vector.load %arg5[%c3_45, %c0_46, %c0_47] : memref<7x7x32xf32, #tpu.memory_space<vmem>>, vector<4x4x32xf32>
    %c3_48 = arith.constant 3 : index
    %c1_49 = arith.constant 1 : index
    %c0_50 = arith.constant 0 : index
    %28 = vector.load %arg5[%c3_48, %c1_49, %c0_50] : memref<7x7x32xf32, #tpu.memory_space<vmem>>, vector<4x4x32xf32>
    %c3_51 = arith.constant 3 : index
    %c2_52 = arith.constant 2 : index
    %c0_53 = arith.constant 0 : index
    %29 = vector.load %arg5[%c3_51, %c2_52, %c0_53] : memref<7x7x32xf32, #tpu.memory_space<vmem>>, vector<4x4x32xf32>
    %c3_54 = arith.constant 3 : index
    %c3_55 = arith.constant 3 : index
    %c0_56 = arith.constant 0 : index
    %30 = vector.load %arg5[%c3_54, %c3_55, %c0_56] : memref<7x7x32xf32, #tpu.memory_space<vmem>>, vector<4x4x32xf32>
    %31 = tpu.concatenate %15, %16, %17, %18, %19, %20, %21, %22, %23, %24, %25, %26, %27, %28, %29, %30 in 2 : vector<4x4x32xf32>, vector<4x4x32xf32>, vector<4x4x32xf32>, vector<4x4x32xf32>, vector<4x4x32xf32>, vector<4x4x32xf32>, vector<4x4x32xf32>, vector<4x4x32xf32>, vector<4x4x32xf32>, vector<4x4x32xf32>, vector<4x4x32xf32>, vector<4x4x32xf32>, vector<4x4x32xf32>, vector<4x4x32xf32>, vector<4x4x32xf32>, vector<4x4x32xf32> -> vector<4x4x512xf32>
    %32 = vector.shape_cast %31 : vector<4x4x512xf32> to vector<16x512xf32>
    %33 = arith.truncf %32 : vector<16x512xf32> to vector<16x512xbf16>
    %c0_57 = arith.constant 0 : index
    %c0_58 = arith.constant 0 : index
    %34 = vector.load %arg2[%c0_57, %c0_58] : memref<512x32xf32, #tpu.memory_space<vmem>>, vector<512x32xf32>
    %cst_59 = arith.constant 6.250000e-02 : f32
    %35 = vector.broadcast %cst_59 : f32 to vector<512x32xf32>
    %36 = arith.mulf %34, %35 : vector<512x32xf32>
    %37 = arith.truncf %36 : vector<512x32xf32> to vector<512x32xbf16>
    %cst_60 = arith.constant dense<0.000000e+00> : vector<16x32xf32>
    %38 = tpu.matmul %33, %37, %cst_60 {dimension_numbers = #tpu.dot_dimension_numbers<[1], [0], [0], [1], [0, 0, 1, 1], [], []>} : vector<16x512xbf16>, vector<512x32xbf16>, vector<16x32xf32> -> vector<16x32xf32>
    %c0_61 = arith.constant 0 : index
    %c0_62 = arith.constant 0 : index
    %39 = vector.load %arg3[%c0_61, %c0_62] : memref<1x32xf32, #tpu.memory_space<vmem>>, vector<1x32xf32>
    %40 = vector.broadcast %39 : vector<1x32xf32> to vector<16x32xf32>
    %41 = arith.addf %38, %40 : vector<16x32xf32>
    %42 = arith.mulf %41, %41 : vector<16x32xf32>
    %cst_63 = arith.constant dense<0.000000e+00> : vector<16xf32>
    %43 = vector.multi_reduction <add>, %42, %cst_63 [1] : vector<16x32xf32> to vector<16xf32>
    %44 = vector.shape_cast %43 : vector<16xf32> to vector<16x1xf32>
    %cst_64 = arith.constant 3.200000e+01 : f32
    %45 = vector.broadcast %cst_64 : f32 to vector<16x1xf32>
    %46 = arith.divf %44, %45 : vector<16x1xf32>
    %cst_65 = arith.constant 9.99999993E-9 : f32
    %47 = vector.broadcast %cst_65 : f32 to vector<16x1xf32>
    %48 = arith.addf %46, %47 : vector<16x1xf32>
    %49 = math.rsqrt %48 : vector<16x1xf32>
    %50 = vector.broadcast %49 : vector<16x1xf32> to vector<16x32xf32>
    %51 = arith.mulf %41, %50 : vector<16x32xf32>
    %cst_66 = arith.constant 0.000000e+00 : f32
    %52 = vector.broadcast %cst_66 : f32 to vector<16x32xf32>
    %53 = arith.cmpf oge, %51, %52 : vector<16x32xf32>
    %cst_67 = arith.constant 2.000000e-01 : f32
    %54 = vector.broadcast %cst_67 : f32 to vector<16x32xf32>
    %55 = arith.mulf %54, %51 : vector<16x32xf32>
    %56 = arith.select %53, %51, %55 : vector<16x32xi1>, vector<16x32xf32>
    %c0_68 = arith.constant 0 : index
    %c0_69 = arith.constant 0 : index
    %c0_70 = arith.constant 0 : index
    %57 = vector.load %arg4[%c0_68, %c0_69, %c0_70] : memref<1x16x32xf32, #tpu.memory_space<vmem>>, vector<1x16x32xf32>
    %58 = vector.shape_cast %57 : vector<1x16x32xf32> to vector<16x32xf32>
    %59 = vector.shape_cast %56 : vector<16x32xf32> to vector<1x16x32xf32>
    tpu.vector_store %arg4[%c0_68, %c0_69, %c0_70], %59 {strides = array<i32>} : memref<1x16x32xf32, #tpu.memory_space<vmem>>, vector<1x16x32xf32>,
    return
  }
  func.func @transform_0(%arg0: i32) -> (i32, i32, i32, i32) {
    %c0_i32 = arith.constant 0 : i32
    %c0_i32_0 = arith.constant 0 : i32
    %c0_i32_1 = arith.constant 0 : i32
    %c0_i32_2 = arith.constant 0 : i32
    return %arg0, %c0_i32, %c0_i32_0, %c0_i32_1 : i32, i32, i32, i32
  }
  func.func @transform_1(%arg0: i32) -> (i32, i32) {
    %c0_i32 = arith.constant 0 : i32
    %c0_i32_0 = arith.constant 0 : i32
    %c0_i32_1 = arith.constant 0 : i32
    return %c0_i32, %c0_i32_0 : i32, i32
  }
  func.func @transform_2(%arg0: i32) -> (i32, i32) {
    %c0_i32 = arith.constant 0 : i32
    %c0_i32_0 = arith.constant 0 : i32
    %c0_i32_1 = arith.constant 0 : i32
    return %c0_i32, %c0_i32_0 : i32, i32
  }
  func.func @transform_3(%arg0: i32) -> (i32, i32, i32) {
    %c0_i32 = arith.constant 0 : i32
    %c0_i32_0 = arith.constant 0 : i32
    %c0_i32_1 = arith.constant 0 : i32
    return %arg0, %c0_i32, %c0_i32_0 : i32, i32, i32
  }
}

</mosaic_0001>

<bundles_post_ra>
// kernel: tpu_custom_call.1
= control target key start
LH: loop header
LB: loop body
LE: loop exit
PB: predicated region body
PF: predicated region fallthrough
CT: control target
= control target key end

     0   :  { %8 = vsyncpa [#allocation4], 0  ;;  %s1567_s0 = inlined_call_operand.vmem [shape: f32[2,1,1,32], index: 0, kind: input, shape index: {}]   ;;  %s1568_s1 = inlined_call_operand.vmem [shape: f32[512,32], index: 1, kind: input, shape index: {}]   ;;  %s1569_s2 = inlined_call_operand.vmem [shape: f32[1,32], index: 2, kind: input, shape index: {}]   ;;  %s1570_s3 = inlined_call_operand.hbm [shape: f32[2,16,32], index: 3, kind: output, shape index: {}]  }
   0x1   :  { %10 = vsyncpa [#allocation4 + $0x1], 0  ;;  %s1088_s12 = smov 0   ;;  %s1090_s13 = smov 0  }
   0x2   :  { %s1092_s14 = smov 0   ;;  %s1094_s15 = smov 0  }
   0x3 LB: > { %s1109_s16 = sadd.s32 4294967295, %s1059_s15   ;;  %s884_s17 = sadd.s32 4294967294, %s1059_s15   ;;  %s1059_s15 = sphi %s1094_s15, %s1576_s15   ;;  %s1055_s14 = sphi %s1092_s14, %s1575_s14   ;;  %s1051_s13 = sphi %s1090_s13, %s1574_s13   ;;  %s1047_s12 = sphi %s1088_s12, %s1573_s12  }
   0x4   : > { %s1113_s18 = sadd.s32 1, %s1059_s15   ;;  %s91_s19 = sadd.s32 1, %s1055_s14 }
   0x5   : > { %s88_s20 = ssub.s32 %s1059_s15, %s1113_s18  ;;  %p101_p0 = scmp.ne.s32.totalorder %s1055_s14, %s1051_s13 }
   0x6   : > { %p89_p1 = scmp.eq.s32.totalorder %s88_s20, 0  ;;  %p102_p2 = scmp.eq.s32.totalorder %s1109_s16, 1 }
   0x7   : > { %p107_p3 = scmp.ne.s32.totalorder %s1051_s13, %s1047_s12  ;;  %p108_p4 = scmp.eq.s32.totalorder %s884_s17, 1 }
   0x8   : > { %s1124_s21 = scalar_select %p89_p1, %s1055_s14, %s91_s19  }
   0x9   : > { %p1126_p5 = por %p102_p2, %p101_p0  ;;  %p1130_p6 = por %p108_p4, %p107_p3 }
   0xa   : > { %p887_p7 = scmp.ge.s32.totalorder %s1059_s15, 1  ;;  %p138_p8 = scmp.lt.s32.totalorder %s1059_s15, 3 }
   0xc   : > { %p139_p9 = pnand %p887_p7, %p138_p8 }
   0xd   : > { %p160_p10 = scmp.lt.s32.totalorder (!%p139_p9), %s1109_s16, 1  ;;  %s1062_s28 = smov (!%p139_p9), 32  }
   0xe   : > { %142 = sbr.rel (%p139_p9) target bundleno = 722 (0x2d2), region = 32  ;;  %s1063_s29 = smov (!%p139_p9), 64  }
   0xf   : > { %s1064_s30 = smov (!%p139_p9), 96   ;;  %s903_s19 = sshll.u32 (!%p139_p9), %s1109_s16, 8 }
  0x10   : > { %s1065_s5 = smov (!%p139_p9), [#allocation3]  }
  0x11   : > { %s1003_s6 = sshll.u32 (!%p139_p9), %s1065_s5, 4  ;;  %s1004_s6 = int_to_ptr.vmem [resolvable:$false] %s1003_s6 }
  0x12   : > { %s1005_s7 = scalar_lea.vmem (!%p139_p9), %s1004_s6, 512 }
  0x13   : > { %vm175_vm0 = vcmask 260096   ;;  %v1061_v0 = vmov 0.0   ;;  %s161_s24 = scalar_select %p160_p10, %s1109_s16, 1  ;;  %vm166_vm1 = vcmask 253952   ;;  %v568_v37 = vld [vmem:[%s1568_s1 + $0xf0] sm:$0xff]  ;;  %v569_v38 = vld [vmem:[%s1568_s1 + $0xf8] sm:$0xff] }
  0x14   : > { %178 = vst.msk [vmem:[#allocation2 + $0x10] sm:$0x7f] %vm175_vm0, %v1061_v0  ;;  %176 = vst.msk [vmem:[#allocation2] sm:$0x7f] %vm175_vm0, %v1061_v0  ;;  %v552_v39 = vld [vmem:[%s1568_s1 + $0x70] sm:$0xff]  ;;  %v632_v40 = vmul.f32 0.0625, %v568_v37 }
  0x15   : > { %177 = vst.msk [vmem:[#allocation2 + $0x8] sm:$0x7f] %vm175_vm0, %v1061_v0  ;;  %179 = vst.msk [vmem:[#allocation2 + $0x18] sm:$0x7f] %vm175_vm0, %v1061_v0  ;;  %s162_s27 = scalar_lea.vmem %s1567_s0, %s161_s24  ;;  %v633_v41 = vmul.f32 0.0625, %v569_v38  ;;  %v553_v42 = vld [vmem:[%s1568_s1 + $0x78] sm:$0xff] }
  0x16   : > { %180 = vst.msk [vmem:[#allocation2 + $0x20] sm:$0x7f] %vm175_vm0, %v1061_v0  ;;  %181 = vst.msk [vmem:[#allocation2 + $0x28] sm:$0x7f] %vm175_vm0, %v1061_v0  ;;  %v1141_v1 = vld [vmem:[%s162_s27] sm:$0x1]  ;;  %s1522_s27 = scalar_lea.hbm %s1570_s3, %s903_s19 }
  0x17   : > { %182 = vst.msk [vmem:[#allocation2 + $0x30] sm:$0x7f] %vm175_vm0, %v1061_v0  ;;  %v165_v2 = vmul.f32 %v1141_v1, %v1141_v1  ;;  %v616_v43 = vmul.f32 0.0625, %v552_v39  ;;  %v566_v44 = vld [vmem:[%s1568_s1 + $0xe0] sm:$0xff]  ;;  %v567_v45 = vld [vmem:[%s1568_s1 + $0xe8] sm:$0xff]  ;;  %v617_v46 = vmul.f32 0.0625, %v553_v42  ;;  %v681_v52 = vpack.c.bf16 %v633_v41, %v632_v40 }
  0x18   : > { %v630_v47 = vmul.f32 0.0625, %v566_v44  ;;  %v631_v48 = vmul.f32 0.0625, %v567_v45  ;;  %v550_v49 = vld [vmem:[%s1568_s1 + $0x60] sm:$0xff]  ;;  %v551_v50 = vld [vmem:[%s1568_s1 + $0x68] sm:$0xff]  ;;  %v564_v51 = vld [vmem:[%s1568_s1 + $0xd0] sm:$0xff]  ;;  %vm443_vm2 = vcmask 261120  }
  0x19   : > { %v167_v3 = vsel %vm166_vm1, %v165_v2, 0.0  ;;  %v614_v53 = vmul.f32 0.0625, %v550_v49  ;;  %v615_v54 = vmul.f32 0.0625, %v551_v50  ;;  %v565_v55 = vld [vmem:[%s1568_s1 + $0xd8] sm:$0xff]  ;;  %v628_v56 = vmul.f32 0.0625, %v564_v51  ;;  %v548_v57 = vld [vmem:[%s1568_s1 + $0x50] sm:$0xff]  ;;  %904 = vmatprep.subr.bf16.mxu0 %v681_v52 }
  0x1a   : > { %168 = vadd.xlane.f32.xlu0 %v167_v3  ;;  %v549_v58 = vld [vmem:[%s1568_s1 + $0x58] sm:$0xff]  ;;  %v673_v59 = vpack.c.bf16 %v617_v46, %v616_v43  ;;  %v680_v60 = vpack.c.bf16 %v631_v48, %v630_v47  ;;  %v629_v61 = vmul.f32 0.0625, %v565_v55  ;;  %v562_v62 = vld [vmem:[%s1568_s1 + $0xc0] sm:$0xff]  ;;  %v563_v63 = vld [vmem:[%s1568_s1 + $0xc8] sm:$0xff]  ;;  %v612_v3 = vmul.f32 0.0625, %v548_v57 }
  0x1b   : > { %v207_v4 = vld [vmem:[#allocation2 + $0x11] sm:$0xf]  ;;  %v189_v6 = vld [vmem:[#allocation2 + $0x1] sm:$0xf]  ;;  %v672_v2 = vpack.c.bf16 %v615_v54, %v614_v53  ;;  %v601_v40 = vld [vmem:[%s1568_s1 + $0x1f8] sm:$0xff]  ;;  %vm448_vm3 = vcmask 523264  }
  0x1c   : > { %305 = vrot.lane.b32.xlu1 %v207_v4, %s1062_s28  ;;  %v190_v7 = vld [vmem:[#allocation2 + $0x9] sm:$0xf]  ;;  %v191_v8 = vld [vmem:[#allocation2 + $0x11] sm:$0xf]  ;;  %v193_v14 = vld [vmem:[#allocation2 + $0x2] sm:$0xf]  ;;  %905 = vmatpush3.bf16.msra.mxu0 %v673_v59 }
  0x1d   : > { %v209_v5 = vld [vmem:[#allocation2 + $0x21] sm:$0xf]  ;;  %v211_v9 = vld [vmem:[#allocation2 + $0x12] sm:$0xf]  ;;  %v206_v10 = vld [vmem:[#allocation2 + $0x9] sm:$0xf]  ;;  %906 = vmatprep.subr.bf16.mxu0 %v680_v60 }
  0x1e   : > { %v213_v11 = vld [vmem:[#allocation2 + $0x22] sm:$0xf]  ;;  %v210_v12 = vld [vmem:[#allocation2 + $0xa] sm:$0xf]  ;;  %v215_v15 = vld [vmem:[#allocation2 + $0x13] sm:$0xf] }
  0x1f   : > { %v194_v13 = vld [vmem:[#allocation2 + $0xa] sm:$0xf]  ;;  %v195_v16 = vld [vmem:[#allocation2 + $0x12] sm:$0xf]  ;;  %v217_v17 = vld [vmem:[#allocation2 + $0x23] sm:$0xf] }
  0x20   : > { %309 = vrot.lane.b32.xlu1 %v209_v5, %s1062_s28  ;;  %v214_v18 = vld [vmem:[#allocation2 + $0xb] sm:$0xf]  ;;  %v240_v19 = vld [vmem:[#allocation2 + $0x21] sm:$0xf]  ;;  %v242_v21 = vld [vmem:[#allocation2 + $0x31] sm:$0xf]  ;;  %v679_v5 = vpack.c.bf16 %v629_v61, %v628_v56  ;;  %907 = vmatpush3.bf16.msra.mxu0 %v672_v2 }
  0x21   : > { %v241_v20 = vld [vmem:[#allocation2 + $0x29] sm:$0xf]  ;;  %v197_v22 = vld [vmem:[#allocation2 + $0x3] sm:$0xf]  ;;  %v199_v24 = vld [vmem:[#allocation2 + $0x13] sm:$0xf] }
  0x22   : > { %v198_v23 = vld [vmem:[#allocation2 + $0xb] sm:$0xf]  ;;  %v223_v26 = vld [vmem:[#allocation2 + $0x11] sm:$0xf]  ;;  %v244_v27 = vld [vmem:[#allocation2 + $0x22] sm:$0xf]  ;;  %908 = vmatprep.subr.bf16.mxu0 %v679_v5 }
  0x23   : > { %v226_v25 = vld [vmem:[#allocation2 + $0x29] sm:$0xf]  ;;  %v225_v28 = vld [vmem:[#allocation2 + $0x21] sm:$0xf]  ;;  %v246_v29 = vld [vmem:[#allocation2 + $0x32] sm:$0xf] }
  0x24   : > { %255 = vrot.lane.b32.xlu1 %v189_v6, %s1062_s28  ;;  %v245_v30 = vld [vmem:[#allocation2 + $0x2a] sm:$0xf]  ;;  %v227_v32 = vld [vmem:[#allocation2 + $0x12] sm:$0xf]  ;;  %v248_v33 = vld [vmem:[#allocation2 + $0x23] sm:$0xf] }
  0x25   : > { %v230_v31 = vld [vmem:[#allocation2 + $0x2a] sm:$0xf]  ;;  %v229_v34 = vld [vmem:[#allocation2 + $0x22] sm:$0xf]  ;;  %v250_v35 = vld [vmem:[#allocation2 + $0x33] sm:$0xf] }
  0x26   : > { %v249_v36 = vld [vmem:[#allocation2 + $0x2b] sm:$0xf]  ;;  %v231_v0 = vld [vmem:[#allocation2 + $0x13] sm:$0xf]  ;;  %v613_v4 = vmul.f32 0.0625, %v549_v58  ;;  %v626_v6 = vmul.f32 0.0625, %v562_v62 }
  0x27   : > { %v544_v42 = vld [vmem:[%s1568_s1 + $0x30] sm:$0xff]  ;;  %v545_v43 = vld [vmem:[%s1568_s1 + $0x38] sm:$0xff]  ;;  %v665_v46 = vmul.f32 0.0625, %v601_v40  ;;  %v558_v58 = vld [vmem:[%s1568_s1 + $0xa0] sm:$0xff]  ;;  %vm453_vm4 = vcmask 785408  }
  0x28   : > { %257 = vrot.lane.b32.xlu1 %v190_v7, %s1062_s28  ;;  %v627_v7 = vmul.f32 0.0625, %v563_v63  ;;  %v608_v47 = vmul.f32 0.0625, %v544_v42  ;;  %v609_v48 = vmul.f32 0.0625, %v545_v43  ;;  %v584_v49 = vld [vmem:[%s1568_s1 + $0x170] sm:$0xff]  ;;  %v585_v50 = vld [vmem:[%s1568_s1 + $0x178] sm:$0xff]  ;;  %v559_v59 = vld [vmem:[%s1568_s1 + $0xa8] sm:$0xff] }
  0x29   : > { %v648_v53 = vmul.f32 0.0625, %v584_v49  ;;  %v649_v54 = vmul.f32 0.0625, %v585_v50  ;;  %v622_v63 = vmul.f32 0.0625, %v558_v58  ;;  %v599_v2 = vld [vmem:[%s1568_s1 + $0x1e8] sm:$0xff]  ;;  %v580_v43 = vld [vmem:[%s1568_s1 + $0x150] sm:$0xff] }
  0x2a   : > { %v669_v57 = vpack.c.bf16 %v609_v48, %v608_v47  ;;  %v644_v47 = vmul.f32 0.0625, %v580_v43  ;;  %v575_v43 = vld [vmem:[%s1568_s1 + $0x128] sm:$0xff] }
  0x2b   : > { %v689_v62 = vpack.c.bf16 %v649_v54, %v648_v53 }
  0x2c   : > { %259 = vrot.lane.b32.xlu1 %v191_v8, %s1062_s28  ;;  %v546_v8 = vld [vmem:[%s1568_s1 + $0x40] sm:$0xff] }
  0x30   : > { %321 = vrot.lane.b32.xlu1 %v211_v9, %s1063_s29  ;;  %303 = vrot.lane.b32.xlu0 %v206_v10, %s1062_s28  ;;  %v547_v9 = vld [vmem:[%s1568_s1 + $0x48] sm:$0xff]  ;;  %v671_v10 = vpack.c.bf16 %v613_v4, %v612_v3  ;;  %v542_v3 = vld [vmem:[%s1568_s1 + $0x20] sm:$0xff] }
  0x31   : > { %v543_v4 = vld [vmem:[%s1568_s1 + $0x28] sm:$0xff] }
  0x32   : > { %909 = vmatpush3.bf16.msra.mxu0 %v671_v10  ;;  %v583_v10 = vld [vmem:[%s1568_s1 + $0x168] sm:$0xff] }
  0x34   : > { %325 = vrot.lane.b32.xlu1 %v213_v11, %s1063_s29  ;;  %319 = vrot.lane.b32.xlu0 %v210_v12, %s1063_s29  ;;  %v610_v11 = vmul.f32 0.0625, %v546_v8  ;;  %v611_v12 = vmul.f32 0.0625, %v547_v9  ;;  %v606_v8 = vmul.f32 0.0625, %v542_v3  ;;  %v582_v9 = vld [vmem:[%s1568_s1 + $0x160] sm:$0xff] }
  0x38   : > { %273 = vrot.lane.b32.xlu1 %v194_v13, %s1063_s29  ;;  %271 = vrot.lane.b32.xlu0 %v193_v14, %s1063_s29  ;;  %v678_v13 = vpack.c.bf16 %v627_v7, %v626_v6  ;;  %v670_v14 = vpack.c.bf16 %v611_v12, %v610_v11  ;;  %v663_v7 = vmul.f32 0.0625, %v599_v2  ;;  %v607_v12 = vmul.f32 0.0625, %v543_v4  ;;  %v594_v4 = vld [vmem:[%s1568_s1 + $0x1c0] sm:$0xff] }
  0x3a   : > { %910 = vmatprep.subr.bf16.mxu0 %v678_v13  ;;  %v646_v13 = vmul.f32 0.0625, %v582_v9  ;;  %v539_v9 = vld [vmem:[%s1568_s1 + $0x8] sm:$0xff] }
  0x3b   : > { %911 = vmatpush3.bf16.msra.mxu0 %v670_v14  ;;  %v647_v14 = vmul.f32 0.0625, %v583_v10 }
  0x3c   : > { %337 = vrot.lane.b32.xlu1 %v215_v15, %s1064_s30  ;;  %275 = vrot.lane.b32.xlu0 %v195_v16, %s1063_s29 }
  0x40   : > { %341 = vrot.lane.b32.xlu1 %v217_v17, %s1064_s30  ;;  %335 = vrot.lane.b32.xlu0 %v214_v18, %s1064_s30 }
  0x44   : > { %401 = vrot.lane.b32.xlu1 %v240_v19, %s1062_s28  ;;  %403 = vrot.lane.b32.xlu0 %v241_v20, %s1062_s28 }
  0x48   : > { %405 = vrot.lane.b32.xlu1 %v242_v21, %s1062_s28  ;;  %287 = vrot.lane.b32.xlu0 %v197_v22, %s1064_s30 }
  0x4c   : > { %289 = vrot.lane.b32.xlu1 %v198_v23, %s1064_s30  ;;  %291 = vrot.lane.b32.xlu0 %v199_v24, %s1064_s30 }
  0x50   : > { %357 = vrot.lane.b32.xlu1 %v226_v25, %s1062_s28  ;;  %351 = vrot.lane.b32.xlu0 %v223_v26, %s1062_s28 }
  0x54   : > { %417 = vrot.lane.b32.xlu1 %v244_v27, %s1063_s29  ;;  %355 = vrot.lane.b32.xlu0 %v225_v28, %s1062_s28 }
  0x58   : > { %421 = vrot.lane.b32.xlu1 %v246_v29, %s1063_s29  ;;  %419 = vrot.lane.b32.xlu0 %v245_v30, %s1063_s29 }
  0x5c   : > { %373 = vrot.lane.b32.xlu1 %v230_v31, %s1063_s29  ;;  %367 = vrot.lane.b32.xlu0 %v227_v32, %s1063_s29  ;;  %v186_v31 = vld [vmem:[#allocation2 + $0x8] sm:$0xf]  ;;  %v185_v32 = vld [vmem:[#allocation2] sm:$0xf] }
  0x60   : > { %433 = vrot.lane.b32.xlu1 %v248_v33, %s1064_s30  ;;  %371 = vrot.lane.b32.xlu0 %v229_v34, %s1063_s29  ;;  %v560_v34 = vld [vmem:[%s1568_s1 + $0xb0] sm:$0xff] }
  0x61   : > { %v624_v38 = vmul.f32 0.0625, %v560_v34  ;;  %v688_v34 = vpack.c.bf16 %v647_v14, %v646_v13  ;;  %v603_v14 = vmul.f32 0.0625, %v539_v9 }
  0x64   : > { %437 = vrot.lane.b32.xlu1 %v250_v35, %s1064_s30  ;;  %435 = vrot.lane.b32.xlu0 %v249_v36, %s1064_s30  ;;  %v561_v35 = vld [vmem:[%s1568_s1 + $0xb8] sm:$0xff]  ;;  %v600_v36 = vld [vmem:[%s1568_s1 + $0x1f0] sm:$0xff] }
  0x65   : > { %v625_v39 = vmul.f32 0.0625, %v561_v35  ;;  %v664_v41 = vmul.f32 0.0625, %v600_v36  ;;  %v597_v36 = vld [vmem:[%s1568_s1 + $0x1d8] sm:$0xff] }
  0x66   : > { %v661_v42 = vmul.f32 0.0625, %v597_v36  ;;  %v590_v36 = vld [vmem:[%s1568_s1 + $0x1a0] sm:$0xff] }
  0x67   : > { %v677_v52 = vpack.c.bf16 %v625_v39, %v624_v38  ;;  %v697_v56 = vpack.c.bf16 %v665_v46, %v664_v41  ;;  %v540_v38 = vld [vmem:[%s1568_s1 + $0x10] sm:$0xff]  ;;  %v541_v39 = vld [vmem:[%s1568_s1 + $0x18] sm:$0xff] }
  0x68   : > { %383 = vrot.lane.b32.xlu0 %v231_v0, %s1064_s30  ;;  %v623_v0 = vmul.f32 0.0625, %v559_v59  ;;  %v605_v46 = vmul.f32 0.0625, %v541_v39 }
  0x69   : > { %912 = vmatprep.subr.bf16.mxu0 %v677_v52  ;;  %926 = vmatprep.subr.bf16.mxu1 %v697_v56 }
  0x6a   : > { %913 = vmatpush3.bf16.msra.mxu0 %v669_v57  ;;  %927 = vmatpush3.bf16.msra.mxu1 %v689_v62  ;;  %v676_v11 = vpack.c.bf16 %v623_v0, %v622_v63  ;;  %v555_v62 = vld [vmem:[%s1568_s1 + $0x88] sm:$0xff] }
  0x6b   : > { %v619_v3 = vmul.f32 0.0625, %v555_v62  ;;  %v573_v62 = vld [vmem:[%s1568_s1 + $0x118] sm:$0xff] }
  0x6c   : > { %914 = vmatprep.subr.bf16.mxu0 %v676_v11  ;;  %v578_v11 = vld [vmem:[%s1568_s1 + $0x140] sm:$0xff] }
  0x8e   : > { %v1228_v15 = vpop.permute.xlu1 %305 }
  0x92   : > { %v1230_v16 = vpop.permute.xlu1 %309 }
  0x96   : > { %v256_v17 = vpop.permute.xlu1 %255 }
  0x97   : > { %v444_v60 = vsel %vm443_vm2, %v185_v32, %v256_v17  ;;  %v668_v32 = vpack.c.bf16 %v607_v12, %v606_v8  ;;  %v579_v12 = vld [vmem:[%s1568_s1 + $0x148] sm:$0xff] }
  0x99   : > { %915 = vmatpush3.bf16.msra.mxu0 %v668_v32 }
  0x9a   : > { %v258_v18 = vpop.permute.xlu1 %257 }
  0x9b   : > { %v445_v45 = vsel %vm443_vm2, %v186_v31, %v258_v18 }
  0x9e   : > { %v1232_v19 = vpop.permute.xlu1 %259 }
  0xa2   : > { %v1234_v20 = vpop.permute.xlu1 %321 }
  0xa3   : > { %v169_v21 = vpop.xlane.xlu0 %168 }
  0xa4   : > { %v171_v22 = vmul.f32 0.03125, %v169_v21  ;;  %v556_v21 = vld [vmem:[%s1568_s1 + $0x90] sm:$0xff] }
  0xa5   : > { %v620_v35 = vmul.f32 0.0625, %v556_v21  ;;  %v643_v21 = vmul.f32 0.0625, %v579_v12  ;;  %v571_v12 = vld [vmem:[%s1568_s1 + $0x108] sm:$0xff] }
  0xa6   : > { %v1236_v23 = vpop.permute.xlu1 %325  ;;  %v172_v24 = vadd.f32 1e-08, %v171_v22  ;;  %v557_v22 = vld [vmem:[%s1568_s1 + $0x98] sm:$0xff] }
  0xa7   : > { %v1238_v25 = vpop.permute.xlu0 %303 }
  0xa8   : > { %993 = vrsqrt.f32 %v172_v24  ;;  %v596_v24 = vld [vmem:[%s1568_s1 + $0x1d0] sm:$0xff] }
  0xa9   : > { %v660_v41 = vmul.f32 0.0625, %v596_v24  ;;  %v593_v24 = vld [vmem:[%s1568_s1 + $0x1b8] sm:$0xff] }
  0xaa   : > { %v274_v26 = vpop.permute.xlu1 %273 }
  0xab   : > { %v1240_v27 = vpop.permute.xlu0 %319  ;;  %v450_v5 = vsel %vm448_vm3, %v445_v45, %v274_v26  ;;  %v604_v45 = vmul.f32 0.0625, %v540_v38  ;;  %v695_v53 = vpack.c.bf16 %v661_v42, %v660_v41  ;;  %v591_v41 = vld [vmem:[%s1568_s1 + $0x1a8] sm:$0xff]  ;;  %v574_v42 = vld [vmem:[%s1568_s1 + $0x120] sm:$0xff] }
  0xad   : > { %v667_v56 = vpack.c.bf16 %v605_v46, %v604_v45  ;;  %v654_v46 = vmul.f32 0.0625, %v590_v36 }
  0xae   : > { %v1242_v28 = vpop.permute.xlu1 %337 }
  0xaf   : > { %v1244_v29 = vpop.permute.xlu0 %271 }
  0xb0   : > { %v449_v26 = vsel %vm448_vm3, %v444_v60, %v1244_v29  ;;  %v621_v29 = vmul.f32 0.0625, %v557_v22  ;;  %v554_v60 = vld [vmem:[%s1568_s1 + $0x80] sm:$0xff]  ;;  %v592_v22 = vld [vmem:[%s1568_s1 + $0x1b0] sm:$0xff] }
  0xb1   : > { %v618_v2 = vmul.f32 0.0625, %v554_v60  ;;  %v656_v32 = vmul.f32 0.0625, %v592_v22  ;;  %v572_v60 = vld [vmem:[%s1568_s1 + $0x110] sm:$0xff] }
  0xb2   : > { %v1246_v30 = vpop.permute.xlu1 %341  ;;  %v675_v52 = vpack.c.bf16 %v621_v29, %v620_v35  ;;  %v577_v35 = vld [vmem:[%s1568_s1 + $0x138] sm:$0xff] }
  0xb3   : > { %v1248_v33 = vpop.permute.xlu0 %275  ;;  %v674_v13 = vpack.c.bf16 %v619_v3, %v618_v2  ;;  %v641_v45 = vmul.f32 0.0625, %v577_v35  ;;  %v636_v3 = vmul.f32 0.0625, %v572_v60 }
  0xb4   : > { %916 = vmatprep.subr.bf16.mxu0 %v675_v52 }
  0xb5   : > { %v994_v44 = vpop.eup %993  ;;  %917 = vmatpush3.bf16.msra.mxu0 %v667_v56  ;;  %v589_v56 = vld [vmem:[%s1568_s1 + $0x198] sm:$0xff] }
  0xb6   : > { %v1259_v37 = vpop.permute.xlu1 %401  ;;  %v174_v51 = vmul.f32 %v994_v44, %v1141_v1  ;;  %v598_v1 = vld [vmem:[%s1568_s1 + $0x1e0] sm:$0xff]  ;;  %v581_v44 = vld [vmem:[%s1568_s1 + $0x158] sm:$0xff]  ;;  %918 = vmatprep.subr.bf16.mxu0 %v674_v13 }
  0xb7   : > { %v1278_v55 = vpop.permute.xlu0 %335  ;;  %v662_v6 = vmul.f32 0.0625, %v598_v1  ;;  %v645_v48 = vmul.f32 0.0625, %v581_v44 }
  0xb8   : > { %184 = vst.msk [vmem:[#allocation2 + $0x1b] sm:$0x1] %vm166_vm1, %v174_v51 }
  0xb9   : > { %v696_v18 = vpack.c.bf16 %v663_v7, %v662_v6  ;;  %v687_v57 = vpack.c.bf16 %v645_v48, %v644_v47  ;;  %v538_v6 = vld [vmem:[%s1568_s1] sm:$0xff]  ;;  %v658_v7 = vmul.f32 0.0625, %v594_v4  ;;  %v655_v47 = vmul.f32 0.0625, %v591_v41 }
  0xba   : > { %v1291_v61 = vpop.permute.xlu1 %405  ;;  %v602_v10 = vmul.f32 0.0625, %v538_v6  ;;  %v637_v4 = vmul.f32 0.0625, %v573_v62  ;;  %v587_v6 = vld [vmem:[%s1568_s1 + $0x188] sm:$0xff] }
  0xbb   : > { %v1309_v17 = vpop.permute.xlu0 %403  ;;  %928 = vmatprep.subr.bf16.mxu1 %v696_v18  ;;  %v642_v18 = vmul.f32 0.0625, %v578_v11  ;;  %v570_v11 = vld [vmem:[%s1568_s1 + $0x100] sm:$0xff] }
  0xbc   : > { %929 = vmatpush3.bf16.msra.mxu1 %v688_v34  ;;  %v657_v34 = vmul.f32 0.0625, %v593_v24  ;;  %v666_v38 = vpack.c.bf16 %v603_v14, %v602_v10  ;;  %v651_v10 = vmul.f32 0.0625, %v587_v6  ;;  %v683_v14 = vpack.c.bf16 %v637_v4, %v636_v3  ;;  %v238_v4 = vld [vmem:[#allocation2 + $0x30] sm:$0xf] }
  0xbd   : > { %930 = vmatprep.subr.bf16.mxu1 %v695_v53  ;;  %v686_v39 = vpack.c.bf16 %v643_v21, %v642_v18  ;;  %v588_v53 = vld [vmem:[%s1568_s1 + $0x190] sm:$0xff]  ;;  %v634_v18 = vmul.f32 0.0625, %v570_v11  ;;  %v635_v21 = vmul.f32 0.0625, %v571_v12 }
  0xbe   : > { %v290_v31 = vpop.permute.xlu1 %289  ;;  %v693_v44 = vpack.c.bf16 %v657_v34, %v656_v32  ;;  %919 = vmatpush3.bf16.msra.mxu0 %v666_v38 }
  0xbf   : > { %v1332_v40 = vsel %vm453_vm4, %v450_v5, %v290_v31  ;;  %v212_v49 = vld [vmem:[#allocation2 + $0x1a] sm:$0xf]  ;;  %v288_v51 = vpop.permute.xlu0 %287  ;;  %v595_v5 = vld [vmem:[%s1568_s1 + $0x1c8] sm:$0xff] }
  0xc0   : > { %v208_v50 = vld [vmem:[#allocation2 + $0x19] sm:$0xf]  ;;  %323 = vrot.lane.b32.xlu0 %v212_v49, %s1063_s29  ;;  %v1343_v54 = vsel %vm453_vm4, %v449_v26, %v288_v51  ;;  %931 = vmatpush3.bf16.msra.mxu1 %v687_v57  ;;  %v659_v8 = vmul.f32 0.0625, %v595_v5  ;;  %v576_v26 = vld [vmem:[%s1568_s1 + $0x130] sm:$0xff]  ;;  %v639_v51 = vmul.f32 0.0625, %v575_v43  ;;  %v692_v57 = vpack.c.bf16 %v655_v47, %v654_v46  ;;  %v586_v5 = vld [vmem:[%s1568_s1 + $0x180] sm:$0xff] }
  0xc1   : > { %307 = vrot.lane.b32.xlu1 %v208_v50, %s1062_s28  ;;  %v889_v58 = vcombine.low %v1343_v54, %v1332_v40  ;;  %v216_v59 = vld [vmem:[#allocation2 + $0x1b] sm:$0xf]  ;;  %v640_v29 = vmul.f32 0.0625, %v576_v26  ;;  %v638_v50 = vmul.f32 0.0625, %v574_v42  ;;  %v650_v9 = vmul.f32 0.0625, %v586_v5 }
  0xc2   : > { %v192_v1 = vld [vmem:[#allocation2 + $0x19] sm:$0xf]  ;;  %v694_v31 = vpack.c.bf16 %v659_v8, %v658_v7  ;;  %v233_v7 = vld [vmem:[#allocation2 + $0x23] sm:$0xf]  ;;  %v682_v26 = vpack.c.bf16 %v635_v21, %v634_v18  ;;  %v1433_v35 = vpop.permute.xlu1 %357  ;;  %v203_v46 = vld [vmem:[#allocation2 + $0x10] sm:$0xf] }
  0xc3   : > { %v239_v63 = vld [vmem:[#allocation2 + $0x19] sm:$0xf]  ;;  %v685_v52 = vpack.c.bf16 %v641_v45, %v640_v29  ;;  %v684_v2 = vpack.c.bf16 %v639_v51, %v638_v50  ;;  %v690_v22 = vpack.c.bf16 %v651_v10, %v650_v9  ;;  %v292_v32 = vpop.permute.xlu0 %291  ;;  %v202_v47 = vld [vmem:[#allocation2 + $0x8] sm:$0xf]  ;;  %v459_v51 = vsel %vm443_vm2, %v203_v46, %v1228_v15 }
  0xc4   : > { %339 = vrot.lane.b32.xlu0 %v216_v59, %s1064_s30  ;;  %v196_v0 = vld [vmem:[#allocation2 + $0x1a] sm:$0xf]  ;;  %932 = vmatprep.subr.bf16.mxu1 %v694_v31  ;;  %v652_v59 = vmul.f32 0.0625, %v588_v53  ;;  %v234_v31 = vld [vmem:[#allocation2 + $0x2b] sm:$0xf]  ;;  %v485_v10 = vsel %vm443_vm2, %v238_v4, %v1291_v61 }
  0xc5   : > { %261 = vrot.lane.b32.xlu1 %v192_v1, %s1062_s28  ;;  %v243_v48 = vld [vmem:[#allocation2 + $0x1a] sm:$0xf]  ;;  %933 = vmatpush3.bf16.msra.mxu1 %v686_v39  ;;  %v653_v1 = vmul.f32 0.0625, %v589_v56  ;;  %v463_v56 = vsel %vm448_vm3, %v459_v51, %v1234_v20  ;;  %v237_v5 = vld [vmem:[#allocation2 + $0x28] sm:$0xf] }
  0xc6   : > { %v200_v49 = vld [vmem:[#allocation2 + $0x1b] sm:$0xf]  ;;  %934 = vmatprep.subr.bf16.mxu1 %v693_v44  ;;  %v418_v38 = vpop.permute.xlu1 %417  ;;  %v484_v11 = vsel %vm443_vm2, %v237_v5, %v1309_v17 }
  0xc7   : > { %v691_v8 = vpack.c.bf16 %v653_v1, %v652_v59  ;;  %v228_v13 = vld [vmem:[#allocation2 + $0x1a] sm:$0xf]  ;;  %v1431_v34 = vpop.permute.xlu0 %351 }
  0xc8   : > { %399 = vrot.lane.b32.xlu0 %v239_v63, %s1062_s28  ;;  %v247_v63 = vld [vmem:[#allocation2 + $0x1b] sm:$0xf] }
  0xc9   : > { %277 = vrot.lane.b32.xlu1 %v196_v0, %s1063_s29  ;;  %v224_v0 = vld [vmem:[#allocation2 + $0x19] sm:$0xf]  ;;  %935 = vmatpush3.bf16.msra.mxu1 %v685_v52  ;;  %v458_v52 = vsel %vm443_vm2, %v202_v47, %v1238_v25  ;;  %v467_v25 = vsel %vm453_vm4, %v463_v56, %v1242_v28 }
  0xca   : > { %936 = vmatprep.subr.bf16.mxu1 %v692_v57  ;;  %v232_v24 = vld [vmem:[#allocation2 + $0x1b] sm:$0xf]  ;;  %v422_v29 = vpop.permute.xlu1 %421  ;;  %v462_v57 = vsel %vm448_vm3, %v458_v52, %v1240_v27 }
  0xcb   : > { %v1435_v36 = vpop.permute.xlu0 %355  ;;  %v204_v1 = vld [vmem:[#allocation2 + $0x18] sm:$0xf] }
  0xcc   : > { %415 = vrot.lane.b32.xlu0 %v243_v48, %s1063_s29  ;;  %v205_v48 = vld [vmem:[#allocation2 + $0x20] sm:$0xf]  ;;  %v188_v12 = vld [vmem:[#allocation2 + $0x18] sm:$0xf] }
  0xcd   : > { %293 = vrot.lane.b32.xlu1 %v200_v49, %s1064_s30  ;;  %937 = vmatpush3.bf16.msra.mxu1 %v684_v2  ;;  %v461_v53 = vsel %vm443_vm2, %v205_v48, %v1230_v16  ;;  %v466_v16 = vsel %vm453_vm4, %v462_v57, %v1278_v55  ;;  %v222_v57 = vld [vmem:[#allocation2 + $0x28] sm:$0xf] }
  0xce   : > { %938 = vmatprep.subr.bf16.mxu1 %v691_v8  ;;  %v1439_v42 = vpop.permute.xlu1 %373  ;;  %v465_v15 = vsel %vm448_vm3, %v461_v53, %v1236_v23  ;;  %v890_v6 = vcombine.low %v466_v16, %v467_v25  ;;  %v473_v40 = vsel %vm443_vm2, %v222_v57, %v1433_v35 }
  0xcf   : > { %v420_v39 = vpop.permute.xlu0 %419  ;;  %v469_v27 = vsel %vm453_vm4, %v465_v15, %v1246_v30 }
  0xd0   : > { %431 = vrot.lane.b32.xlu0 %v247_v63, %s1064_s30  ;;  %v187_v63 = vld [vmem:[#allocation2 + $0x10] sm:$0xf]  ;;  %v488_v18 = vsel %vm448_vm3, %v484_v11, %v420_v39 }
  0xd1   : > { %353 = vrot.lane.b32.xlu1 %v224_v0, %s1062_s28  ;;  %939 = vmatpush3.bf16.msra.mxu1 %v683_v14  ;;  %v446_v28 = vsel %vm443_vm2, %v187_v63, %v1232_v19  ;;  %v489_v14 = vsel %vm448_vm3, %v485_v10, %v422_v29 }
  0xd2   : > { %940 = vmatprep.subr.bf16.mxu1 %v690_v22  ;;  %v434_v44 = vpop.permute.xlu1 %433  ;;  %v451_v30 = vsel %vm448_vm3, %v446_v28, %v1248_v33 }
  0xd3   : > { %v1437_v41 = vpop.permute.xlu0 %367  ;;  %v456_v17 = vsel %vm453_vm4, %v451_v30, %v292_v32 }
  0xd4   : > { %387 = vrot.lane.b32.xlu0 %v233_v7, %s1064_s30  ;;  %v236_v7 = vld [vmem:[#allocation2 + $0x20] sm:$0xf] }
  0xd5   : > { %369 = vrot.lane.b32.xlu1 %v228_v13, %s1063_s29  ;;  %941 = vmatpush3.bf16.msra.mxu1 %v682_v26  ;;  %v483_v13 = vsel %vm443_vm2, %v236_v7, %v1259_v37  ;;  %v235_v26 = vld [vmem:[#allocation2 + $0x18] sm:$0xf] }
  0xd6   : > { %v438_v49 = vpop.permute.xlu1 %437  ;;  %v487_v33 = vsel %vm448_vm3, %v483_v13, %v418_v38 }
  0xd7   : > { %v1441_v43 = vpop.permute.xlu0 %371  ;;  %v493_v37 = vsel %vm453_vm4, %v489_v14, %v438_v49  ;;  %v491_v51 = vsel %vm453_vm4, %v487_v33, %v434_v44  ;;  %v219_v49 = vld [vmem:[#allocation2 + $0x10] sm:$0xf] }
  0xd9   : > { %385 = vrot.lane.b32.xlu1 %v232_v24, %s1064_s30 }
  0xdb   : > { %v436_v45 = vpop.permute.xlu0 %435 }
  0xdc   : > { %v492_v46 = vsel %vm453_vm4, %v488_v18, %v436_v45 }
  0xdd   : > { %389 = vrot.lane.b32.xlu1 %v234_v31, %s1064_s30  ;;  %v896_v53 = vcombine.low %v492_v46, %v493_v37  ;;  %s157_s30 = sand.u32 1, %s1051_s13  }
  0xde   : > { %s888_s17 = sshll.u32 %s157_s30, 4  ;;  %s1527_s16 = scalar_lea.sflag [#allocation4], %s157_s30 }
  0xdf   : > { %v1443_v50 = vpop.permute.xlu0 %383  ;;  %s159_s20 = scalar_lea.vmem [#allocation3], %s888_s17 }
  0xe0   : > { %s825_s24 = sshll.u32 %s159_s20, 4  ;;  %s1524_s24 = int_to_ptr.vmem [resolvable:$true] %s825_s24 }
  0xe1   : > { %s999_s4 = scalar_lea.vmem %s1524_s24, 256  ;;  %p1006_p0 = scmp.lt.s32.totalorder %s1524_s24, %s1004_s6 }
  0xe2   : > { %p1000_p11 = scmp.ne.s32.totalorder %s1524_s24, %s999_s4  ;;  %p1007_p1 = scmp.lt.s32.totalorder %s1005_s7, %s999_s4 }
  0xe4   : > { %p1001_p12 = pnand %p1000_p11, %p1126_p5  ;;  %p1008_p2 = por %p1007_p1, %p1006_p0 }
  0xe6   : > { %p1002_p13 = pneg %p1001_p12 }
  0xe8   : > { %p1009_p3 = pnand %p1008_p2, %p1002_p13 }
 0x132   : > { %v324_v60 = vpop.permute.xlu0 %323 }
 0x133   : > { %v308_v59 = vpop.permute.xlu1 %307 }
 0x134   : > { %v460_v62 = vsel %vm443_vm2, %v204_v1, %v308_v59  ;;  %v221_v59 = vld [vmem:[#allocation2 + $0x20] sm:$0xf]  ;;  %v470_v1 = vsel %vm443_vm2, %v219_v49, %v1431_v34  ;;  %v477_v34 = vsel %vm448_vm3, %v473_v40, %v1439_v42 }
 0x135   : > { %v464_v20 = vsel %vm448_vm3, %v460_v62, %v324_v60  ;;  %v220_v60 = vld [vmem:[#allocation2 + $0x18] sm:$0xf]  ;;  %v472_v54 = vsel %vm443_vm2, %v221_v59, %v1435_v36  ;;  %v474_v44 = vsel %vm448_vm3, %v470_v1, %v1437_v41  ;;  %v897_v42 = vld [vmem:[%s1569_s2] ss:$0 sm:$0xff] }
 0x136   : > { %v340_v2 = vpop.permute.xlu0 %339  ;;  %v476_v63 = vsel %vm448_vm3, %v472_v54, %v1441_v43  ;;  %v478_v36 = vsel %vm453_vm4, %v474_v44, %v1443_v50 }
 0x137   : > { %v262_v0 = vpop.permute.xlu1 %261  ;;  %v468_v3 = vsel %vm453_vm4, %v464_v20, %v340_v2 }
 0x138   : > { %v894_v23 = vcombine.low %v468_v3, %v469_v27  ;;  %v447_v19 = vsel %vm443_vm2, %v188_v12, %v262_v0 }
 0x13a   : > { %v400_v55 = vpop.permute.xlu0 %399  ;;  %v535_v9 = vpack.c.bf16 %v894_v23, %v890_v6 }
 0x13b   : > { %v278_v8 = vpop.permute.xlu1 %277  ;;  %v482_v29 = vsel %vm443_vm2, %v235_v26, %v400_v55 }
 0x13c   : > { %737 = vmatprep.mubr.bf16.mxu0 %v535_v9  ;;  %v452_v21 = vsel %vm448_vm3, %v447_v19, %v278_v8 }
 0x13e   : > { %v416_v22 = vpop.permute.xlu0 %415 }
 0x13f   : > { %v294_v61 = vpop.permute.xlu1 %293  ;;  %v486_v39 = vsel %vm448_vm3, %v482_v29, %v416_v22 }
 0x140   : > { %v457_v24 = vsel %vm453_vm4, %v452_v21, %v294_v61 }
 0x141   : > { %v893_v31 = vcombine.low %v456_v17, %v457_v24 }
 0x142   : > { %v432_v48 = vpop.permute.xlu0 %431 }
 0x143   : > { %v354_v47 = vpop.permute.xlu1 %353  ;;  %v534_v32 = vpack.c.bf16 %v893_v31, %v889_v58  ;;  %v490_v38 = vsel %vm453_vm4, %v486_v39, %v432_v48 }
 0x144   : > { %v892_v52 = vcombine.low %v490_v38, %v491_v51  ;;  %v471_v58 = vsel %vm443_vm2, %v220_v60, %v354_v47 }
 0x145   : > { %738 = vmatmul.mubr.bf16.vlgmr.msra.gmra.mxu0 %v534_v32 }
 0x146   : > { %v537_v45 = vpack.c.bf16 %v896_v53, %v892_v52  ;;  %v388_v25 = vpop.permute.xlu0 %387 }
 0x147   : > { %v370_v56 = vpop.permute.xlu1 %369  ;;  %v480_v20 = vsel %vm453_vm4, %v476_v63, %v388_v25 }
 0x148   : > { %778 = vmatprep.mubr.bf16.mxu1 %v537_v45  ;;  %v475_v15 = vsel %vm448_vm3, %v471_v58, %v370_v56 }
 0x14b   : > { %v386_v62 = vpop.permute.xlu1 %385 }
 0x14c   : > { %v479_v16 = vsel %vm453_vm4, %v475_v15, %v386_v62 }
 0x14d   : > { %v891_v41 = vcombine.low %v478_v36, %v479_v16 }
 0x14f   : > { %v390_v35 = vpop.permute.xlu1 %389 }
 0x150   : > { %v481_v0 = vsel %vm453_vm4, %v477_v34, %v390_v35 }
 0x151   : > { %v895_v2 = vcombine.low %v480_v20, %v481_v0 }
 0x153   : > { %v536_v27 = vpack.c.bf16 %v895_v2, %v891_v41 }
 0x155   : > { %779 = vmatmul.mubr.bf16.vlgmr.msra.gmra.mxu1 %v536_v27 }
 0x205   : > { %v920_v3 = vpop.f32.mrf.mxu0 }
 0x207   : > { %v921_v4 = vpop.f32.mrf.mxu0 }
 0x208   : > { %v922_v6 = vadd.f32 %v921_v4, %v920_v3 }
 0x209   : > { %v923_v5 = vpop.f32.mrf.mxu0 }
 0x20a   : > { %v740_v50 = vadd.f32 %v922_v6, %v897_v42 }
 0x20b   : > { %v924_v43 = vpop.f32.mrf.mxu0 }
 0x20c   : > { %v925_v7 = vadd.f32 %v924_v43, %v923_v5 }
 0x20e   : > { %v743_v11 = vadd.f32 %v925_v7, %v897_v42 }
 0x215   : > { %v942_v23 = vpop.f32.mrf.mxu1 }
 0x217   : > { %v943_v28 = vpop.f32.mrf.mxu1 }
 0x218   : > { %v944_v8 = vadd.f32 %v943_v28, %v942_v23 }
 0x219   : > { %v945_v55 = vpop.f32.mrf.mxu1 }
 0x21a   : > { %v781_v9 = vadd.f32 %v944_v8, %v740_v50 }
 0x21b   : > { %v946_v10 = vpop.f32.mrf.mxu1 }
 0x21c   : > { %v947_v30 = vadd.f32 %v946_v10, %v945_v55  ;;  %v787_v12 = vmul.f32 %v781_v9, %v781_v9 }
 0x21e   : > { %v784_v13 = vadd.f32 %v947_v30, %v743_v11  ;;  %v789_v19 = vsel %vm443_vm2, %v787_v12, 0.0 }
 0x21f   : > { %790 = vadd.xlane.f32.xlu0 %v789_v19 }
 0x220   : > { %v788_v14 = vmul.f32 %v784_v13, %v784_v13 }
 0x222   : > { %v792_v18 = vsel %vm443_vm2, %v788_v14, 0.0 }
 0x223   : > { %793 = vadd.xlane.f32.xlu1 %v792_v18 }
 0x2a8   : > { %v791_v21 = vpop.xlane.xlu0 %790 }
 0x2a9   : > { %v795_v61 = vmul.f32 0.03125, %v791_v21 }
 0x2ab   : > { %v797_v22 = vadd.f32 1e-08, %v795_v61 }
 0x2ac   : > { %v794_v17 = vpop.xlane.xlu1 %793 }
 0x2ad   : > { %995 = vrsqrt.f32 %v797_v22  ;;  %v796_v24 = vmul.f32 0.03125, %v794_v17 }
 0x2af   : > { %v798_v33 = vadd.f32 1e-08, %v796_v24 }
 0x2b1   : > { %997 = vrsqrt.f32 %v798_v33 }
 0x2ba   : > { %v996_v26 = vpop.eup %995 }
 0x2bb   : > { %v801_v31 = vmul.f32 %v996_v26, %v781_v9 }
 0x2bd   : > { %vm803_vm5 = vcmp.ge.f32.partialorder %v801_v31, 0.0  ;;  %v805_v37 = vmul.f32 0.2, %v801_v31 }
 0x2be   : > { %v998_v46 = vpop.eup %997 }
 0x2bf   : > { %v802_v29 = vmul.f32 %v998_v46, %v784_v13  ;;  %v807_v39 = vsel %vm803_vm5, %v801_v31, %v805_v37 }
 0x2c0   : > { %809 = vst.msk [vmem:[%s159_s20] sm:$0xff] %vm443_vm2, %v807_v39 }
 0x2c1   : > { %vm804_vm6 = vcmp.ge.f32.partialorder %v802_v29, 0.0  ;;  %v806_v47 = vmul.f32 0.2, %v802_v29 }
 0x2c3   : > { %v808_v48 = vsel %vm804_vm6, %v802_v29, %v806_v47 }
 0x2c4   : > { %810 = vst.msk [vmem:[%s159_s20 + $0x8] sm:$0xff] %vm443_vm2, %v808_v48 }
 0x2c5   : > { %1012 = shalt.err (!%p1009_p3)
}
 0x2c6   : > { %s1013_s8 = scalar_lea.hbm %s1522_s27, 256  ;;  %s1017_s11 = scalar_lea.hbm %s1570_s3, 512 }
 0x2c7   : > { %p1014_p4 = scmp.ne.s32.totalorder %s1522_s27, %s1013_s8  ;;  %p1018_p9 = scmp.lt.s32.totalorder %s1522_s27, %s1570_s3 }
 0x2c8   : > { %p1019_p10 = scmp.lt.s32.totalorder %s1017_s11, %s1013_s8 }
 0x2c9   : > { %p1015_p7 = pnand %p1014_p4, %p1126_p5 }
 0x2ca   : > { %p1020_p11 = por %p1019_p10, %p1018_p9 }
 0x2cb   : > { %p1016_p8 = pneg %p1015_p7 }
 0x2cd   : > { %p1021_p12 = pnand %p1020_p11, %p1016_p8 }
 0x2cf   : > { %1024 = shalt.err (!%p1021_p12)
}
 0x2d0   : > { %s1066_s30 = smov 128   ;;  %s1067_s17 = smov 8  }
 0x2d1   : > { %948 = dma.vmem_to_hbm [thread:$0]  (%p1126_p5), %s1524_s24, 256, %s1522_s27, %s1527_s16, %s1066_s30, %s1066_s30, %s1067_s17  }
 0x2d2 PF: > { %p954_p13 = scmp.ge.s32.totalorder %s1059_s15, 2  ;;  %s840_s19 = sand.u32 1, %s1047_s12  }
 0x2d3   : > { %s841_s20 = scalar_lea.sflag [#allocation4], %s840_s19 }
 0x2d4   : > { %p951_p0 = pnand %p954_p13, %p1130_p6 }
 0x2d6   : > { %p952_p1 = pneg %p951_p0 }
 0x2d8   : > { %1042 = dma.done.wait (%p952_p1), %s841_s20, 256  }
 0x2d9   : > { %1044 = vsyncadd (%p952_p1), %s841_s20, 4294967040  ;;  %p13_p2 = scmp.ge.s32.totalorder %s1113_s18, 4   ;;  %s1573_s12 = smov %s1051_s13 }
 0x2da   : > { %s1574_s13 = smov %s1055_s14  ;;  %s1575_s14 = smov %s1124_s21 }
 0x2db   : > { %s1576_s15 = smov %s1113_s18  ;;  %15 = sbr.rel (!%p13_p2) target bundleno = 3 (0x3), region = 70 }
 0x2e0   :  { %846 = vsyncpa [#allocation4], 1 }
 0x2e1   :  { %848 = vsyncpa [#allocation4 + $0x1], 1 }

</bundles_post_ra>
